<compile_context>
chip_gen: v6e
topology: v6e:2x2x1
jax: 0.10.0
libtpu: 0.0.40
codegen_flags: <defaults>
</compile_context>

<pallas_src>
import functools

import jax
import jax.numpy as jnp
from jax import lax
from jax.experimental import pallas as pl
from jax.experimental.pallas import tpu as pltpu


def _focal_loss_kernel(logits_ref, tgt_ref, out_ref, *, alpha, gamma, n_valid, block_n):
    i = pl.program_id(0)

    logits = logits_ref[...].astype(jnp.float32)      # (C, TN)  classes x samples
    tgt = tgt_ref[...]                                # (1, TN)  int32 class ids
    c, tn = logits.shape

    # One-hot over the class (sublane) axis -- no dynamic gather on the VPU.
    class_ids = lax.broadcasted_iota(jnp.int32, (c, tn), 0)
    onehot = class_ids == tgt                         # (C, TN) via (1,TN) broadcast

    # Numerically stable logsumexp; exp() computed once per (C,TN) element.
    m = jnp.max(logits, axis=0, keepdims=True)        # (1, TN)
    shifted = logits - m
    e = jnp.exp(shifted)                              # (C, TN)
    sumexp = jnp.sum(e, axis=0, keepdims=True)        # (1, TN)
    picked_shift = jnp.sum(jnp.where(onehot, shifted, 0.0), axis=0, keepdims=True)

    # CE = logsumexp(logits) - logits[target]  (clamped >= 0 against fp rounding)
    ce = jnp.maximum(jnp.log(sumexp) - picked_shift, 0.0)
    pt = jnp.exp(-ce)                                 # exact; ce >= 0 => pt <= 1
    w = 1.0 - pt                                      # >= 0 by construction

    if float(gamma).is_integer() and gamma >= 0:      # integer gamma -> pure VPU muls
        ig = int(gamma)
        wg = jnp.ones_like(w) if ig == 0 else w
        for _ in range(max(ig - 1, 0)):
            wg = wg * w
    else:                                             # non-integer gamma -> float power
        wg = w ** gamma

    f = alpha * wg * ce                               # (1, TN) per-sample focal loss

    # Mask overrun tail columns LAST (input tile may read past N; out-of-range output
    # writes are discarded by Pallas, this keeps any garbage strictly local/zeroed).
    col = i * block_n + lax.broadcasted_iota(jnp.int32, (1, tn), 1)
    out_ref[...] = jnp.where(col < n_valid, f, 0.0)


def _pick_block_n(n, c, in_itemsize):
    """Pick a large lane (sample) tile width.

    Live per-column footprint: double-buffered (C, TN) input tile in its HBM dtype,
    ~6 f32 (C, TN) temporaries (cast logits, iota, onehot, shifted, e, where-product),
    plus a handful of (1, TN) f32 rows and the double-buffered target/output rows.
    """
    if n <= 512:
        return n                                      # single full block for tiny N
    c_pad = max(c, 8)                                 # sublane padding to 8
    per_col = 2 * c_pad * in_itemsize + 6 * c_pad * 4 + 16 * 4
    budget = 24 * 1024 * 1024                         # fits easily under 48 MiB limit
    bn = (budget // per_col) // 512 * 512
    bn = max(512, min(bn, 65536))
    # Keep >= 2 grid blocks so the "parallel" axis can shard across 2 TCs (v7x).
    half = pl.cdiv(pl.cdiv(n, 2), 512) * 512
    return min(bn, half)


def focal_loss(logits, targets, alpha=1.0, gamma=2.0, reduction="mean", block_n=None):
    """Focal loss computed by a Pallas TPU kernel.

    logits:  (N, C) float array (f32 or bf16; bf16 is DMA'd as-is and cast in-kernel)
    targets: (N,)   integer class indices
    """
    n, c = logits.shape
    if block_n is None:
        block_n = _pick_block_n(n, c, jnp.dtype(logits.dtype).itemsize)
    assert block_n == n or block_n % 128 == 0, \
        "block_n must be a multiple of 128 (lane width) or equal to N"

    num_blocks = pl.cdiv(n, block_n)

    # Lane-dense layout: classes along sublanes, samples along the 128-wide lane axis.
    # No padding pass: partial boundary blocks are handled by Pallas + in-kernel mask.
    logits_t = logits.T                               # (C, N)
    tgt2d = targets.astype(jnp.int32).reshape(1, n)   # (1, N)

    kernel = functools.partial(
        _focal_loss_kernel,
        alpha=float(alpha), gamma=float(gamma), n_valid=n, block_n=block_n)

    per_sample = pl.pallas_call(
        kernel,
        out_shape=jax.ShapeDtypeStruct((1, n), jnp.float32),
        grid_spec=pltpu.PrefetchScalarGridSpec(
            num_scalar_prefetch=0,
            grid=(num_blocks,),
            in_specs=[
                pl.BlockSpec((c, block_n), lambda i: (0, i)),   # logits tile (C, TN)
                pl.BlockSpec((1, block_n), lambda i: (0, i)),   # target ids  (1, TN)
            ],
            # Lane-dense per-sample output: independent block per grid step (no races).
            out_specs=pl.BlockSpec((1, block_n), lambda i: (0, i)),
        ),
        compiler_params=pltpu.CompilerParams(
            dimension_semantics=("parallel",),        # independent blocks -> megacore OK
            vmem_limit_bytes=48 * 1024 * 1024,        # >= v5e default, <= v7x 64 MiB
        ),
    )(logits_t, tgt2d)

    if reduction == "mean":
        return jnp.sum(per_sample) / n
    elif reduction == "sum":
        return jnp.sum(per_sample)
    else:  # 'none'
        return per_sample[0, :]


def _focal_loss_ref(logits, targets, alpha=1.0, gamma=2.0, reduction="mean"):
    # Pure-JAX reference mirroring torch.nn.functional.cross_entropy + focal weighting.
    logp = jax.nn.log_softmax(logits.astype(jnp.float32), axis=-1)
    ce = -jnp.take_along_axis(logp, targets[:, None].astype(jnp.int32), axis=-1)[:, 0]
    pt = jnp.exp(-ce)
    fl = alpha * (1.0 - pt) ** gamma * ce
    if reduction == "mean":
        return jnp.mean(fl)
    elif reduction == "sum":
        return jnp.sum(fl)
    return fl


if __name__ == "__main__":
    key = jax.random.PRNGKey(0)
    k1, k2 = jax.random.split(key)

    # Small shapes consistent with the module: 16 samples, 4 classes.
    N, C = 16, 4
    logits = jax.random.normal(k1, (N, C), dtype=jnp.float32)
    targets = jax.random.randint(k2, (N,), 0, C, dtype=jnp.int32)

    out = jax.block_until_ready(
        focal_loss(logits, targets, alpha=1.0, gamma=2.0, reduction="mean"))
    ref = _focal_loss_ref(logits, targets, 1.0, 2.0, "mean")
    assert jnp.allclose(out, ref, rtol=1e-5, atol=1e-5), (out, ref)

    # Multi-block grid + overrun-tail masking + bf16 inputs + 'sum' reduction.
    k3, k4 = jax.random.split(k2)
    N2, C2 = 300, 4
    logits2 = jax.random.normal(k3, (N2, C2), dtype=jnp.bfloat16)
    targets2 = jax.random.randint(k4, (N2,), 0, C2, dtype=jnp.int32)
    out2 = jax.block_until_ready(
        focal_loss(logits2, targets2, alpha=0.25, gamma=2.0, reduction="sum", block_n=128))
    ref2 = _focal_loss_ref(logits2, targets2, 0.25, 2.0, "sum")
    assert jnp.allclose(out2, ref2, rtol=1e-4, atol=1e-4), (out2, ref2)

    # Auto block selection (>=2 blocks for the v7x 2-TC split) + 'none' reduction.
    k5, k6 = jax.random.split(k4)
    N3, C3 = 1536, 4
    logits3 = jax.random.normal(k5, (N3, C3), dtype=jnp.float32)
    targets3 = jax.random.randint(k6, (N3,), 0, C3, dtype=jnp.int32)
    out3 = jax.block_until_ready(
        focal_loss(logits3, targets3, alpha=1.0, gamma=2.0, reduction="none"))
    ref3 = _focal_loss_ref(logits3, targets3, 1.0, 2.0, "none")
    assert jnp.allclose(out3, ref3, rtol=1e-5, atol=1e-5), \
        float(jnp.max(jnp.abs(out3 - ref3)))

    print("KERNEL_OK")
</pallas_src>

<mosaic_0001>
module attributes {stable_mosaic.version = 11 : i64} {
  func.func @_focal_loss_kernel(%arg0: i32, %arg1: memref<4x16xf32, #tpu.memory_space<vmem>>, %arg2: memref<1x16xi32, #tpu.memory_space<vmem>>, %arg3: memref<1x16xf32, #tpu.memory_space<vmem>>) attributes {dimension_semantics = [#tpu.dimension_semantics<parallel>], iteration_bounds = array<i64: 1>, scalar_prefetch = 0 : i64, scratch_operands = 0 : i64, tpu.core_type = #tpu.core_type<tc>, window_params = [{transform_indices = @transform_0, window_bounds = array<i64: 4, 16>}, {transform_indices = @transform_1, window_bounds = array<i64: 1, 16>}, {transform_indices = @transform_2, window_bounds = array<i64: 1, 16>}]} {
    %c0 = arith.constant 0 : index
    %c0_0 = arith.constant 0 : index
    %0 = vector.load %arg1[%c0, %c0_0] : memref<4x16xf32, #tpu.memory_space<vmem>>, vector<4x16xf32>
    %c0_1 = arith.constant 0 : index
    %c0_2 = arith.constant 0 : index
    %1 = vector.load %arg2[%c0_1, %c0_2] : memref<1x16xi32, #tpu.memory_space<vmem>>, vector<1x16xi32>
    %2 = tpu.iota {dimensions = array<i32: 0>} : vector<4x16xi32>
    %3 = vector.broadcast %1 : vector<1x16xi32> to vector<4x16xi32>
    %4 = arith.cmpi eq, %2, %3 : vector<4x16xi32>
    %cst = arith.constant dense<0xFF800000> : vector<16xf32>
    %5 = vector.multi_reduction <maximumf>, %0, %cst [0] : vector<4x16xf32> to vector<16xf32>
    %6 = vector.shape_cast %5 : vector<16xf32> to vector<1x16xf32>
    %7 = vector.broadcast %6 : vector<1x16xf32> to vector<4x16xf32>
    %8 = arith.subf %0, %7 : vector<4x16xf32>
    %9 = math.exp %8 : vector<4x16xf32>
    %cst_3 = arith.constant dense<0.000000e+00> : vector<16xf32>
    %10 = vector.multi_reduction <add>, %9, %cst_3 [0] : vector<4x16xf32> to vector<16xf32>
    %11 = vector.shape_cast %10 : vector<16xf32> to vector<1x16xf32>
    %cst_4 = arith.constant 0.000000e+00 : f32
    %12 = vector.broadcast %cst_4 : f32 to vector<4x16xf32>
    %13 = arith.select %4, %8, %12 : vector<4x16xi1>, vector<4x16xf32>
    %cst_5 = arith.constant dense<0.000000e+00> : vector<16xf32>
    %14 = vector.multi_reduction <add>, %13, %cst_5 [0] : vector<4x16xf32> to vector<16xf32>
    %15 = vector.shape_cast %14 : vector<16xf32> to vector<1x16xf32>
    %16 = math.log %11 : vector<1x16xf32>
    %17 = arith.subf %16, %15 : vector<1x16xf32>
    %cst_6 = arith.constant 0.000000e+00 : f32
    %18 = vector.broadcast %cst_6 : f32 to vector<1x16xf32>
    %19 = arith.maximumf %17, %18 : vector<1x16xf32>
    %cst_7 = arith.constant 0.000000e+00 : f32
    %20 = vector.broadcast %cst_7 : f32 to vector<1x16xf32>
    %21 = arith.subf %20, %19 : vector<1x16xf32>
    %22 = math.exp %21 : vector<1x16xf32>
    %cst_8 = arith.constant 1.000000e+00 : f32
    %23 = vector.broadcast %cst_8 : f32 to vector<1x16xf32>
    %24 = arith.subf %23, %22 : vector<1x16xf32>
    %25 = arith.mulf %24, %24 : vector<1x16xf32>
    %cst_9 = arith.constant 1.000000e+00 : f32
    %26 = vector.broadcast %cst_9 : f32 to vector<1x16xf32>
    %27 = arith.mulf %26, %25 : vector<1x16xf32>
    %28 = arith.mulf %27, %19 : vector<1x16xf32>
    %c16_i32 = arith.constant 16 : i32
    %29 = arith.muli %arg0, %c16_i32 : i32
    %30 = tpu.iota {dimensions = array<i32: 1>} : vector<1x16xi32>
    %31 = vector.broadcast %29 : i32 to vector<1x16xi32>
    %32 = arith.addi %31, %30 : vector<1x16xi32>
    %c16_i32_10 = arith.constant 16 : i32
    %33 = vector.broadcast %c16_i32_10 : i32 to vector<1x16xi32>
    %34 = arith.cmpi slt, %32, %33 : vector<1x16xi32>
    %cst_11 = arith.constant 0.000000e+00 : f32
    %35 = vector.broadcast %cst_11 : f32 to vector<1x16xf32>
    %36 = arith.select %34, %28, %35 : vector<1x16xi1>, vector<1x16xf32>
    %c0_12 = arith.constant 0 : index
    %c0_13 = arith.constant 0 : index
    %37 = vector.load %arg3[%c0_12, %c0_13] : memref<1x16xf32, #tpu.memory_space<vmem>>, vector<1x16xf32>
    tpu.vector_store %arg3[%c0_12, %c0_13], %36 {strides = array<i32>} : memref<1x16xf32, #tpu.memory_space<vmem>>, vector<1x16xf32>,
    return
  }
  func.func @transform_0(%arg0: i32) -> (i32, i32) {
    %c0_i32 = arith.constant 0 : i32
    %c0_i32_0 = arith.constant 0 : i32
    return %c0_i32, %arg0 : i32, i32
  }
  func.func @transform_1(%arg0: i32) -> (i32, i32) {
    %c0_i32 = arith.constant 0 : i32
    %c0_i32_0 = arith.constant 0 : i32
    return %c0_i32, %arg0 : i32, i32
  }
  func.func @transform_2(%arg0: i32) -> (i32, i32) {
    %c0_i32 = arith.constant 0 : i32
    %c0_i32_0 = arith.constant 0 : i32
    return %c0_i32, %arg0 : i32, i32
  }
}

</mosaic_0001>

<bundles_post_ra>
// kernel: tpu_custom_call.1
= control target key start
LH: loop header
LB: loop body
LE: loop exit
PB: predicated region body
PF: predicated region fallthrough
CT: control target
= control target key end

     0   :  { %7 = vsyncpa [#allocation3], 0  ;;  %s175_s0 = inlined_call_operand.hbm [shape: f32[4,16], index: 0, kind: input, shape index: {}]   ;;  %s176_s1 = inlined_call_operand.vmem [shape: s32[1,16], index: 1, kind: input, shape index: {}]   ;;  %s177_s2 = inlined_call_operand.hbm [shape: f32[1,16], index: 2, kind: output, shape index: {}]  }
   0x1   :  { %8 = vsyncpa [#allocation4], 0  ;;  %s146_s9 = smov [#allocation2]  }
   0x2   :  { %s15_s10 = sshll.u32 %s146_s9, 4  ;;  %s16_s10 = int_to_ptr.vmem [resolvable:$true] %s15_s10 }
   0x3   :  { %s110_s11 = scalar_lea.vmem %s16_s10, 64  ;;  %p115_p1 = scmp.lt.s32.totalorder %s16_s10, %s16_s10 }
   0x4   :  { %p111_p0 = scmp.ne.s32.totalorder %s16_s10, %s110_s11  ;;  %p116_p2 = scmp.lt.s32.totalorder %s110_s11, %s110_s11 }
   0x6   :  { %p117_p3 = por %p116_p2, %p115_p1 }
   0x8   :  { %p118_p4 = pnand %p117_p3, %p111_p0 }
   0xa   :  { %121 = shalt.err (!%p118_p4)
}
   0xb   :  { %18 = dma.hbm_to_vmem [thread:$0]  %s175_s0, 64, %s16_s10, [#allocation3]  }
   0xc   :  { %142 = dma.done.wait [#allocation3], 64  }
   0xd   :  { %143 = vsyncadd [#allocation3], 4294967232  ;;  %vm33_vm0 = vcmask 125952   ;;  %v24_v0 = vld [vmem:[#allocation2] sm:$0xf]  ;;  %v26_v10 = vlaneseq  ;;  %s147_s0 = smov [#allocation5]  }
   0xe   :  { %v34_v1 = vsel %vm33_vm0, %v24_v0, -inf  ;;  %v93_v12 = vld [vmem:[%s176_s1] ss:$0 sm:$0xff]  ;;  %s84_s1 = sshll.u32 %s147_s0, 4  ;;  %vm76_vm3 = vcmask 122880   ;;  %s85_s1 = int_to_ptr.vmem [resolvable:$true] %s84_s1 }
   0xf   :  { %v35_v2 = vrot.slane %v34_v1, 4  ;;  %v27_v11 = vshrl.u32 %v26_v10, 7  ;;  %v71_v36 = vand.u32 127, %v26_v10  ;;  %s122_s16 = scalar_lea.vmem %s85_s1, 16  ;;  %s126_s17 = scalar_lea.vmem %s85_s1, 32 }
  0x10   :  { %p123_p5 = scmp.ne.s32.totalorder %s85_s1, %s122_s16  ;;  %p127_p6 = scmp.lt.s32.totalorder %s85_s1, %s85_s1 }
  0x11   :  { %v36_v3 = vmax.f32 %v34_v1, %v35_v2  ;;  %vm32_vm1 = vcmp.eq.s32.totalorder %v27_v11, %v93_v12  ;;  %vm74_vm2 = vcmp.lt.s32.totalorder %v71_v36, 16  ;;  %p128_p7 = scmp.lt.s32.totalorder %s126_s17, %s122_s16 }
  0x13   :  { %v37_v4 = vrot.slane %v36_v3, 2  ;;  %p129_p8 = por %p128_p7, %p127_p6 }
  0x15   :  { %v38_v5 = vmax.f32 %v36_v3, %v37_v4  ;;  %p130_p9 = pnand %p129_p8, %p123_p5 }
  0x17   :  { %v39_v6 = vrot.slane %v38_v5, 1 }
  0x19   :  { %v40_v7 = vmax.f32 %v38_v5, %v39_v6 }
  0x1b   :  { %v41_v8 = vsub.f32 %v24_v0, %v40_v7 }
  0x1d   :  { %v42_v9 = vmul.f32 1.442695, %v41_v8  ;;  %v51_v14 = vsel %vm32_vm1, %v41_v8, 0.0 }
  0x1e   :  { %v52_v17 = vsel %vm33_vm0, %v51_v14, 0.0 }
  0x1f   :  { %96 = vpow2.f32 %v42_v9  ;;  %v53_v20 = vrot.slane %v52_v17, 4 }
  0x21   :  { %v54_v23 = vadd.f32 %v53_v20, %v52_v17 }
  0x23   :  { %v55_v25 = vrot.slane %v54_v23, 2 }
  0x25   :  { %v56_v26 = vadd.f32 %v55_v25, %v54_v23 }
  0x27   :  { %v57_v27 = vrot.slane %v56_v26, 1 }
  0x29   :  { %v58_v28 = vadd.f32 %v57_v27, %v56_v26 }
  0x2c   :  { %v97_v13 = vpop.eup %96 }
  0x2d   :  { %v44_v15 = vsel %vm33_vm0, %v97_v13, 0.0 }
  0x2e   :  { %v45_v16 = vrot.slane %v44_v15, 4 }
  0x30   :  { %v46_v18 = vadd.f32 %v45_v16, %v44_v15 }
  0x32   :  { %v47_v19 = vrot.slane %v46_v18, 2 }
  0x34   :  { %v48_v21 = vadd.f32 %v47_v19, %v46_v18 }
  0x36   :  { %v49_v22 = vrot.slane %v48_v21, 1 }
  0x38   :  { %v50_v24 = vadd.f32 %v49_v22, %v48_v21 }
  0x3a   :  { %98 = vlog2.f32 %v50_v24 }
  0x47   :  { %v99_v29 = vpop.eup %98 }
  0x48   :  { %v60_v30 = vmul.f32 0.6931472, %v99_v29 }
  0x4a   :  { %v61_v31 = vsub.f32 %v60_v30, %v58_v28 }
  0x4c   :  { %v62_v32 = vmax.f32 %v61_v31, 0.0 }
  0x4e   :  { %v63_v33 = vsub.f32 0.0, %v62_v32 }
  0x50   :  { %v64_v34 = vmul.f32 1.442695, %v63_v33 }
  0x52   :  { %100 = vpow2.f32 %v64_v34 }
  0x5f   :  { %v101_v35 = vpop.eup %100 }
  0x60   :  { %v66_v37 = vsub.f32 1.0, %v101_v35 }
  0x62   :  { %v67_v38 = vmul.f32 %v66_v37, %v66_v37 }
  0x64   :  { %v68_v39 = vmul.f32 %v67_v38, %v62_v32 }
  0x66   :  { %v75_v40 = vsel %vm74_vm2, %v68_v39, 0.0 }
  0x67   :  { %77 = vst.msk [vmem:[#allocation5] sm:$0x1] %vm76_vm3, %v75_v40 }
  0x68   :  { %133 = shalt.err (!%p130_p9)
}
  0x69   :  { %87 = dma.vmem_to_hbm [thread:$0]  %s85_s1, 16, %s177_s2, [#allocation4]  }
  0x6a   :  { %144 = dma.done.wait [#allocation4], 16  }
  0x6b   :  { %145 = vsyncadd [#allocation4], 4294967280 }
  0x6c   :  { %91 = vsyncpa [#allocation3], 1 }
  0x6d   :  { %92 = vsyncpa [#allocation4], 1 }

</bundles_post_ra>
